<compile_context>
chip_gen: v7x
topology: tpu7x:2x2x1
jax: 0.10.0
libtpu: 0.0.40
codegen_flags: <defaults>
</compile_context>

<pallas_src>
import functools

import jax
import jax.numpy as jnp
from jax.experimental import pallas as pl
from jax.experimental.pallas import tpu as pltpu


def _round_up(x, m):
    return ((x + m - 1) // m) * m


def _tpu_topology():
    """(vmem_capacity_bytes, tensorcores_per_chip) with safe fallbacks."""
    vmem = 64 * 1024 * 1024          # conservative fallback: v7x capacity
    cores = 1                        # conservative fallback: v5e / v6e
    try:
        info = pltpu.get_tpu_info()
        vmem = int(getattr(info, "vmem_capacity_bytes", vmem))
        for name in ("num_cores", "core_count", "num_cores_per_chip",
                     "tensorcore_count"):
            v = getattr(info, name, None)
            if v:
                cores = int(v)
                break
    except Exception:
        pass
    return vmem, cores


def _choose_tile_m(M, K, E, in_bytes, out_bytes, step_budget, num_cores):
    """Row-tile size: 128-aligned (16-aligned only when M < 128), balanced
    2-way split only on multi-TensorCore chips (v7x), shrunk in 128-row steps
    to respect the per-step double-buffered VMEM budget."""
    target = 1024
    if M >= target:
        tm = target
    else:
        align = 128 if M >= 128 else 16        # bf16 sublane pack = 16
        tm = _round_up(M, align)
    if num_cores >= 2 and M >= 256:
        # Balanced, 128-aligned per-core chunks (each half >= 128 rows).
        per_core = _round_up(pl.cdiv(M, num_cores), 128)
        tm = min(tm, per_core)
    while tm > 128 and (2 * tm * K * in_bytes + 2 * tm * E * out_bytes) > step_budget:
        tm -= 128
    return tm


def _patch_embed_kernel(p_ref, w_ref, b_ref, o_ref):
    # p_ref: (tm, K_pad) flattened-patches tile (compute dtype)
    # w_ref: (K_pad, E)  projection weight, resident (compute dtype)
    # b_ref: (1, E)      bias, f32
    # o_ref: (tm, E)     output tile (out dtype)
    acc = jnp.dot(p_ref[...], w_ref[...], preferred_element_type=jnp.float32)
    o_ref[...] = (acc + b_ref[...]).astype(o_ref.dtype)


def prepare_patch_embed_params(weight, bias, *, compute_dtype=jnp.bfloat16):
    """One-time weight/bias prep (hoisted out of the per-call path).

    weight: (E, C, ph, pw) Conv2d weight  ->  (K_pad, E) dense matrix
    bias:   (E,)                          ->  (1, E) f32
    """
    E, C, ph, pw = weight.shape
    K = C * ph * pw
    K_pad = _round_up(K, 128)
    w_mat = jnp.asarray(weight).reshape(E, K).T              # (K, E)
    if K_pad != K:
        w_mat = jnp.pad(w_mat, ((0, K_pad - K), (0, 0)))     # zero rows: free
    w_mat = w_mat.astype(compute_dtype)
    b_mat = jnp.asarray(bias).reshape(1, E).astype(jnp.float32)
    return w_mat, b_mat


@functools.partial(jax.jit,
                   static_argnames=("patch_size", "compute_dtype", "out_dtype"))
def patch_embedding(x, w_mat, b_mat, *, patch_size,
                    compute_dtype=jnp.bfloat16, out_dtype=None):
    """Equivalent of PatchEmbedding.forward.

    x:     (B, C, H, W) float32
    w_mat: (K_pad, E)   from prepare_patch_embed_params (compute dtype)
    b_mat: (1, E)       f32
    returns (B, num_patches, E) in out_dtype (default: compute_dtype),
    patches row-major over (H/ph, W/pw).
    """
    if out_dtype is None:
        out_dtype = compute_dtype
    B, C, H, W = x.shape
    ph, pw = patch_size
    K_pad, E = w_mat.shape
    K = C * ph * pw
    Hp, Wp = H // ph, W // pw
    N = Hp * Wp
    M = B * N

    # Layout glue (no math): (B,C,Hp,ph,Wp,pw) -> (B,Hp,Wp,C,ph,pw) -> (M,K).
    # Deliberately NOT fused into the kernel's input DMA: materializing the
    # patches once as a contiguous transpose pass is safer than risking
    # (pw*itemsize)-byte strided fused-DMA segments on an HBM-bound kernel.
    patches = x.reshape(B, C, Hp, ph, Wp, pw)
    patches = patches.transpose(0, 2, 4, 1, 3, 5).reshape(M, K)
    if patches.dtype != compute_dtype:
        patches = patches.astype(compute_dtype)
    if K_pad != K:
        patches = jnp.pad(patches, ((0, 0), (0, K_pad - K)))

    in_bytes = jnp.dtype(compute_dtype).itemsize
    out_bytes = jnp.dtype(out_dtype).itemsize
    vmem_capacity, num_cores = _tpu_topology()

    # Resident (non-tiled) VMEM: double-buffered weight + (8,128)-padded bias.
    weight_bytes = 2 * K_pad * E * in_bytes + 2 * 8 * _round_up(E, 128) * 4
    step_budget = max(4 << 20, vmem_capacity // 2 - weight_bytes)
    tm = _choose_tile_m(M, K_pad, E, in_bytes, out_bytes, step_budget, num_cores)
    grid = (pl.cdiv(M, tm),)   # implicit partial last block; no jnp.pad on M

    step_bytes = 2 * tm * K_pad * in_bytes + 2 * tm * E * out_bytes
    vmem_limit = int(min(vmem_capacity,
                         max(32 << 20, weight_bytes + step_bytes + (8 << 20))))

    cost = pl.CostEstimate(
        flops=2 * M * K_pad * E,
        transcendentals=0,
        bytes_accessed=(M * K_pad * in_bytes + K_pad * E * in_bytes
                        + E * 4 + M * E * out_bytes),
    )

    out_flat = pl.pallas_call(
        _patch_embed_kernel,
        out_shape=jax.ShapeDtypeStruct((M, E), out_dtype),
        grid_spec=pltpu.PrefetchScalarGridSpec(
            num_scalar_prefetch=0,
            grid=grid,
            in_specs=[
                pl.BlockSpec((tm, K_pad), lambda i: (i, 0)),
                # Constant block index: weight / bias are DMA'd only when the
                # block index changes, i.e. once per core — not per step.
                # (pl.Buffered(1) would save another K_pad*E*in_bytes of VMEM;
                # left double-buffered since the budget already accounts for it.)
                pl.BlockSpec((K_pad, E), lambda i: (0, 0)),
                pl.BlockSpec((1, E), lambda i: (0, 0)),
            ],
            out_specs=pl.BlockSpec((tm, E), lambda i: (i, 0)),
        ),
        compiler_params=pltpu.CompilerParams(
            dimension_semantics=("parallel",),
            vmem_limit_bytes=vmem_limit,
        ),
        cost_estimate=cost,
    )(patches, w_mat, b_mat)

    return out_flat.reshape(B, N, E)


def _reference(x, weight, bias, patch_size):
    """Pure-JAX reference (lax conv) mirroring the PyTorch forward."""
    y = jax.lax.conv_general_dilated(
        x, weight,
        window_strides=patch_size,
        padding="VALID",
        dimension_numbers=("NCHW", "OIHW", "NCHW"),
    ) + bias.reshape(1, -1, 1, 1)
    B, E = y.shape[0], y.shape[1]
    return y.reshape(B, E, -1).transpose(0, 2, 1)


if __name__ == "__main__":
    # Small shapes consistent with the module's structure.
    B, C = 2, 4
    H, W = 32, 64
    patch_size = (8, 8)
    E = 128

    key = jax.random.PRNGKey(0)
    kx, kw, kb = jax.random.split(key, 3)

    x = jax.random.normal(kx, (B, C, H, W), dtype=jnp.float32)
    weight = jax.random.normal(kw, (E, C, patch_size[0], patch_size[1]),
                               dtype=jnp.float32) * 0.02
    bias = jax.random.normal(kb, (E,), dtype=jnp.float32) * 0.02

    N = (H // patch_size[0]) * (W // patch_size[1])
    ref = _reference(x, weight, bias, patch_size)

    # f32-operand / f32-output path: tight numerical check.
    w32, b32 = prepare_patch_embed_params(weight, bias,
                                          compute_dtype=jnp.float32)
    out_f32 = jax.block_until_ready(
        patch_embedding(x, w32, b32, patch_size=patch_size,
                        compute_dtype=jnp.float32))
    assert out_f32.shape == (B, N, E)
    assert jnp.allclose(out_f32, ref, atol=1e-4, rtol=1e-4), "f32 mismatch"

    # bf16 operands + bf16 output (default; MXU-native, f32 accumulation,
    # ~half the HBM traffic of the f32 path). Loose check vs the f32 conv ref.
    wbf, bbf = prepare_patch_embed_params(weight, bias,
                                          compute_dtype=jnp.bfloat16)
    out_bf16 = jax.block_until_ready(
        patch_embedding(x, wbf, bbf, patch_size=patch_size,
                        compute_dtype=jnp.bfloat16))
    assert out_bf16.shape == (B, N, E)
    assert out_bf16.dtype == jnp.bfloat16
    assert jnp.allclose(out_bf16.astype(jnp.float32), ref,
                        atol=5e-2, rtol=5e-2), "bf16 mismatch"

    print("KERNEL_OK")
</pallas_src>

<mosaic_0001>
module attributes {stable_mosaic.version = 11 : i64} {
  func.func @_patch_embed_kernel(%arg0: i32, %arg1: memref<64x256xf32, #tpu.memory_space<vmem>>, %arg2: memref<256x128xf32, #tpu.memory_space<vmem>>, %arg3: memref<1x128xf32, #tpu.memory_space<vmem>>, %arg4: memref<64x128xf32, #tpu.memory_space<vmem>>) attributes {dimension_semantics = [#tpu.dimension_semantics<parallel>], iteration_bounds = array<i64: 1>, scalar_prefetch = 0 : i64, scratch_operands = 0 : i64, tpu.core_type = #tpu.core_type<tc>, window_params = [{transform_indices = @transform_0, window_bounds = array<i64: 64, 256>}, {pipeline_mode = #tpu.pipeline_mode<synchronous>, transform_indices = @transform_1, window_bounds = array<i64: 256, 128>}, {pipeline_mode = #tpu.pipeline_mode<synchronous>, transform_indices = @transform_2, window_bounds = array<i64: 1, 128>}, {transform_indices = @transform_3, window_bounds = array<i64: 64, 128>}]} {
    %c0 = arith.constant 0 : index
    %c0_0 = arith.constant 0 : index
    %0 = vector.load %arg1[%c0, %c0_0] : memref<64x256xf32, #tpu.memory_space<vmem>>, vector<64x256xf32>
    %c0_1 = arith.constant 0 : index
    %c0_2 = arith.constant 0 : index
    %1 = vector.load %arg2[%c0_1, %c0_2] : memref<256x128xf32, #tpu.memory_space<vmem>>, vector<256x128xf32>
    %cst = arith.constant dense<0.000000e+00> : vector<64x128xf32>
    %2 = tpu.matmul %0, %1, %cst {dimension_numbers = #tpu.dot_dimension_numbers<[1], [0], [0], [1], [0, 0, 1, 1], [], []>} : vector<64x256xf32>, vector<256x128xf32>, vector<64x128xf32> -> vector<64x128xf32>
    %c0_3 = arith.constant 0 : index
    %c0_4 = arith.constant 0 : index
    %3 = vector.load %arg3[%c0_3, %c0_4] : memref<1x128xf32, #tpu.memory_space<vmem>>, vector<1x128xf32>
    %4 = vector.broadcast %3 : vector<1x128xf32> to vector<64x128xf32>
    %5 = arith.addf %2, %4 : vector<64x128xf32>
    %c0_5 = arith.constant 0 : index
    %c0_6 = arith.constant 0 : index
    %6 = vector.load %arg4[%c0_5, %c0_6] : memref<64x128xf32, #tpu.memory_space<vmem>>, vector<64x128xf32>
    tpu.vector_store %arg4[%c0_5, %c0_6], %5 {strides = array<i32>} : memref<64x128xf32, #tpu.memory_space<vmem>>, vector<64x128xf32>,
    return
  }
  func.func @transform_0(%arg0: i32) -> (i32, i32) {
    %c0_i32 = arith.constant 0 : i32
    %c0_i32_0 = arith.constant 0 : i32
    return %arg0, %c0_i32 : i32, i32
  }
  func.func @transform_1(%arg0: i32) -> (i32, i32) {
    %c0_i32 = arith.constant 0 : i32
    %c0_i32_0 = arith.constant 0 : i32
    %c0_i32_1 = arith.constant 0 : i32
    return %c0_i32, %c0_i32_0 : i32, i32
  }
  func.func @transform_2(%arg0: i32) -> (i32, i32) {
    %c0_i32 = arith.constant 0 : i32
    %c0_i32_0 = arith.constant 0 : i32
    %c0_i32_1 = arith.constant 0 : i32
    return %c0_i32, %c0_i32_0 : i32, i32
  }
  func.func @transform_3(%arg0: i32) -> (i32, i32) {
    %c0_i32 = arith.constant 0 : i32
    %c0_i32_0 = arith.constant 0 : i32
    return %arg0, %c0_i32 : i32, i32
  }
}

</mosaic_0001>

<bundles_post_ra>
// kernel: patch_embedding.1
= control target key start
LH: loop header
LB: loop body
LE: loop exit
PB: predicated region body
PF: predicated region fallthrough
CT: control target
= control target key end

     0   :  { %s513_s0 = inlined_call_operand.vmem [shape: f32[64,256], index: 0, kind: input, shape index: {}]   ;;  %s514_s1 = inlined_call_operand.vmem [shape: f32[256,128], index: 1, kind: input, shape index: {}]   ;;  %s515_s2 = inlined_call_operand.vmem [shape: f32[1,128], index: 2, kind: input, shape index: {}]   ;;  %s516_s3 = inlined_call_operand.hbm [shape: f32[64,128], index: 3, kind: output, shape index: {}]  }
   0x1   :  { %v47_v0 = vld [vmem:[%s514_s1 + $0x80] sm:$0xff]  ;;  %v48_v1 = vld [vmem:[%s514_s1 + $0x88] sm:$0xff]  ;;  %v49_v5 = vld [vmem:[%s514_s1 + $0x90] sm:$0xff] }
   0x2   :  { %v31_v2 = vld [vmem:[%s514_s1] sm:$0xff]  ;;  %v256_v3 = vpack.c.bf16 %v48_v1, %v47_v0  ;;  %v32_v4 = vld [vmem:[%s514_s1 + $0x8] sm:$0xff]  ;;  %v50_v6 = vld [vmem:[%s514_s1 + $0x98] sm:$0xff] }
   0x3   :  { %v258_v7 = vpack.c.bf16 %v32_v4, %v31_v2  ;;  %v260_v8 = vpack.c.bf16 %v50_v6, %v49_v5  ;;  %v33_v9 = vld [vmem:[%s514_s1 + $0x10] sm:$0xff]  ;;  %v34_v10 = vld [vmem:[%s514_s1 + $0x18] sm:$0xff]  ;;  %v51_v11 = vld [vmem:[%s514_s1 + $0xa0] sm:$0xff] }
   0x4   :  { %257 = vmatprep.subr.bf16.mxu0 %v256_v3  ;;  %288 = vmatprep.subr.bf16.mxu1 %v256_v3  ;;  %v52_v12 = vld [vmem:[%s514_s1 + $0xa8] sm:$0xff]  ;;  %v262_v13 = vpack.c.bf16 %v34_v10, %v33_v9  ;;  %v35_v15 = vld [vmem:[%s514_s1 + $0x20] sm:$0xff]  ;;  %v53_v17 = vld [vmem:[%s514_s1 + $0xb0] sm:$0xff] }
   0x5   :  { %259 = vmatpush3.bf16.msra.mxu0 %v258_v7  ;;  %296 = vmatpush3.bf16.msra.mxu1 %v258_v7  ;;  %v264_v14 = vpack.c.bf16 %v52_v12, %v51_v11  ;;  %v36_v16 = vld [vmem:[%s514_s1 + $0x28] sm:$0xff]  ;;  %v54_v18 = vld [vmem:[%s514_s1 + $0xb8] sm:$0xff]  ;;  %v37_v21 = vld [vmem:[%s514_s1 + $0x30] sm:$0xff] }
   0x6   :  { %261 = vmatprep.subr.bf16.mxu0 %v260_v8  ;;  %289 = vmatprep.subr.bf16.mxu1 %v260_v8  ;;  %v266_v19 = vpack.c.bf16 %v36_v16, %v35_v15  ;;  %v268_v20 = vpack.c.bf16 %v54_v18, %v53_v17  ;;  %v38_v22 = vld [vmem:[%s514_s1 + $0x38] sm:$0xff]  ;;  %v55_v23 = vld [vmem:[%s514_s1 + $0xc0] sm:$0xff]  ;;  %v56_v24 = vld [vmem:[%s514_s1 + $0xc8] sm:$0xff] }
   0x7   :  { %v16_v25 = vld [vmem:[%s513_s0 + $0x8] sm:$0xff]  ;;  %v270_v27 = vpack.c.bf16 %v38_v22, %v37_v21  ;;  %v272_v28 = vpack.c.bf16 %v56_v24, %v55_v23  ;;  %v39_v29 = vld [vmem:[%s514_s1 + $0x40] sm:$0xff]  ;;  %v57_v31 = vld [vmem:[%s514_s1 + $0xd0] sm:$0xff] }
   0x8   :  { %134 = vmatprep.mubr.f32.mxu0 %v16_v25  ;;  %v24_v26 = vld [vmem:[%s513_s0 + $0x48] sm:$0xff]  ;;  %v58_v32 = vld [vmem:[%s514_s1 + $0xd8] sm:$0xff] }
   0x9   :  { %263 = vmatpush3.bf16.msra.mxu0 %v262_v13  ;;  %297 = vmatpush3.bf16.msra.mxu1 %v262_v13  ;;  %v40_v30 = vld [vmem:[%s514_s1 + $0x48] sm:$0xff] }
   0xa   :  { %265 = vmatprep.subr.bf16.mxu0 %v264_v14  ;;  %290 = vmatprep.subr.bf16.mxu1 %v264_v14  ;;  %v274_v33 = vpack.c.bf16 %v40_v30, %v39_v29 }
   0xb   :  { %154 = vmatprep.mubr.f32.mxu1 %v24_v26 }
   0xd   :  { %267 = vmatpush3.bf16.msra.mxu0 %v266_v19  ;;  %298 = vmatpush3.bf16.msra.mxu1 %v266_v19 }
   0xe   :  { %269 = vmatprep.subr.bf16.mxu0 %v268_v20  ;;  %291 = vmatprep.subr.bf16.mxu1 %v268_v20 }
  0x11   :  { %271 = vmatpush3.bf16.msra.mxu0 %v270_v27  ;;  %299 = vmatpush3.bf16.msra.mxu1 %v270_v27 }
  0x12   :  { %8 = vsyncpa [#allocation3], 0  ;;  %273 = vmatprep.subr.bf16.mxu0 %v272_v28  ;;  %292 = vmatprep.subr.bf16.mxu1 %v272_v28  ;;  %v276_v34 = vpack.c.bf16 %v58_v32, %v57_v31  ;;  %v41_v35 = vld [vmem:[%s514_s1 + $0x50] sm:$0xff]  ;;  %v42_v36 = vld [vmem:[%s514_s1 + $0x58] sm:$0xff] }
  0x13   :  { %v59_v37 = vld [vmem:[%s514_s1 + $0xe0] sm:$0xff]  ;;  %v60_v38 = vld [vmem:[%s514_s1 + $0xe8] sm:$0xff]  ;;  %v278_v39 = vpack.c.bf16 %v42_v36, %v41_v35  ;;  %v61_v43 = vld [vmem:[%s514_s1 + $0xf0] sm:$0xff] }
  0x14   :  { %v280_v40 = vpack.c.bf16 %v60_v38, %v59_v37  ;;  %v43_v41 = vld [vmem:[%s514_s1 + $0x60] sm:$0xff]  ;;  %v44_v42 = vld [vmem:[%s514_s1 + $0x68] sm:$0xff]  ;;  %v62_v44 = vld [vmem:[%s514_s1 + $0xf8] sm:$0xff] }
  0x15   :  { %275 = vmatpush3.bf16.msra.mxu0 %v274_v33  ;;  %300 = vmatpush3.bf16.msra.mxu1 %v274_v33  ;;  %v282_v45 = vpack.c.bf16 %v44_v42, %v43_v41  ;;  %v284_v46 = vpack.c.bf16 %v62_v44, %v61_v43  ;;  %v45_v47 = vld [vmem:[%s514_s1 + $0x70] sm:$0xff]  ;;  %v46_v48 = vld [vmem:[%s514_s1 + $0x78] sm:$0xff]  ;;  %v15_v50 = vld [vmem:[%s513_s0] sm:$0xff] }
  0x16   :  { %277 = vmatprep.subr.bf16.mxu0 %v276_v34  ;;  %293 = vmatprep.subr.bf16.mxu1 %v276_v34  ;;  %v286_v49 = vpack.c.bf16 %v46_v48, %v45_v47  ;;  %v23_v51 = vld [vmem:[%s513_s0 + $0x40] sm:$0xff]  ;;  %v18_v52 = vld [vmem:[%s513_s0 + $0x18] sm:$0xff]  ;;  %v17_v54 = vld [vmem:[%s513_s0 + $0x10] sm:$0xff] }
  0x17   :  { %v26_v53 = vld [vmem:[%s513_s0 + $0x58] sm:$0xff]  ;;  %v25_v55 = vld [vmem:[%s513_s0 + $0x50] sm:$0xff]  ;;  %v20_v56 = vld [vmem:[%s513_s0 + $0x28] sm:$0xff] }
  0x18   :  { %v28_v57 = vld [vmem:[%s513_s0 + $0x68] sm:$0xff]  ;;  %v19_v58 = vld [vmem:[%s513_s0 + $0x20] sm:$0xff]  ;;  %v22_v60 = vld [vmem:[%s513_s0 + $0x38] sm:$0xff] }
  0x19   :  { %279 = vmatpush3.bf16.msra.mxu0 %v278_v39  ;;  %301 = vmatpush3.bf16.msra.mxu1 %v278_v39  ;;  %v27_v59 = vld [vmem:[%s513_s0 + $0x60] sm:$0xff]  ;;  %v30_v61 = vld [vmem:[%s513_s0 + $0x78] sm:$0xff]  ;;  %v21_v62 = vld [vmem:[%s513_s0 + $0x30] sm:$0xff] }
  0x1a   :  { %281 = vmatprep.subr.bf16.mxu0 %v280_v40  ;;  %294 = vmatprep.subr.bf16.mxu1 %v280_v40  ;;  %v29_v63 = vld [vmem:[%s513_s0 + $0x70] sm:$0xff]  ;;  %v199_v2 = vld [vmem:[%s515_s2] ss:$0 sm:$0xff]  ;;  %s331_s0 = smov [#allocation2]  }
  0x1b   :  { %s188_s2 = sshll.u32 %s331_s0, 4  ;;  %s189_s2 = int_to_ptr.vmem [resolvable:$true] %s188_s2 }
  0x1c   :  { %s307_s28 = scalar_lea.vmem %s189_s2, 1024  ;;  %p312_p1 = scmp.lt.s32.totalorder %s189_s2, %s189_s2 }
  0x1d   :  { %283 = vmatpush3.bf16.msra.mxu0 %v282_v45  ;;  %302 = vmatpush3.bf16.msra.mxu1 %v282_v45  ;;  %p308_p0 = scmp.ne.s32.totalorder %s189_s2, %s307_s28  ;;  %p313_p2 = scmp.lt.s32.totalorder %s307_s28, %s307_s28 }
  0x1e   :  { %285 = vmatprep.subr.bf16.mxu0 %v284_v46  ;;  %295 = vmatprep.subr.bf16.mxu1 %v284_v46 }
  0x1f   :  { %p314_p3 = por %p313_p2, %p312_p1 }
  0x21   :  { %287 = vmatpush3.bf16.msra.mxu0 %v286_v49  ;;  %303 = vmatpush3.bf16.msra.mxu1 %v286_v49  ;;  %p315_p4 = pnand %p314_p3, %p308_p0 }
  0x24   :  { %135 = vmatmul.mubr.f32.vlgmr.msra.gmra.mrb[0].mxu0 %v15_v50  ;;  %155 = vmatmul.mubr.f32.vlgmr.msra.gmra.mrb[0].mxu1 %v23_v51 }
  0x25   :  { %139 = vmatprep.mubr.f32.mxu0 %v18_v52  ;;  %159 = vmatprep.mubr.f32.mxu1 %v26_v53 }
  0x28   :  { %140 = vmatmul.mubr.f32.gmra.mrb[2].mxu0 %v17_v54  ;;  %160 = vmatmul.mubr.f32.gmra.mrb[2].mxu1 %v25_v55 }
  0x29   :  { %144 = vmatprep.mubr.f32.mxu0 %v20_v56  ;;  %164 = vmatprep.mubr.f32.mxu1 %v28_v57 }
  0x2c   :  { %145 = vmatmul.mubr.f32.gmra.mrb[4].mxu0 %v19_v58  ;;  %165 = vmatmul.mubr.f32.gmra.mrb[4].mxu1 %v27_v59 }
  0x2d   :  { %149 = vmatprep.mubr.f32.mxu0 %v22_v60  ;;  %169 = vmatprep.mubr.f32.mxu1 %v30_v61 }
  0x30   :  { %150 = vmatmul.mubr.f32.gmra.mrb[6].mxu0 %v21_v62  ;;  %170 = vmatmul.mubr.f32.gmra.mrb[6].mxu1 %v29_v63 }
  0xf7   :  { %v232_v0 = vpop.f32.mrb[0].mxu0  ;;  %v244_v1 = vpop.f32.mrb[0].mxu1 }
  0xf8   :  { %v233_v3 = vpop.f32.mrb[1].mxu0  ;;  %v245_v4 = vpop.f32.mrb[1].mxu1 }
  0xf9   :  { %v234_v5 = vadd.f32 %v233_v3, %v232_v0  ;;  %v246_v6 = vadd.f32 %v245_v4, %v244_v1 }
  0xfb   :  { %v137_v7 = vadd.f32 %v234_v5, %v199_v2  ;;  %v157_v8 = vadd.f32 %v246_v6, %v199_v2  ;;  %v235_v9 = vpop.f32.mrb[2].mxu0  ;;  %v247_v10 = vpop.f32.mrb[2].mxu1 }
  0xfc   :  { %v236_v11 = vpop.f32.mrb[3].mxu0  ;;  %v248_v12 = vpop.f32.mrb[3].mxu1 }
  0xfd   :  { %175 = vst [vmem:[#allocation2] sm:$0xff] %v137_v7  ;;  %179 = vst [vmem:[#allocation2 + $0x20] sm:$0xff] %v157_v8  ;;  %v237_v13 = vadd.f32 %v236_v11, %v235_v9  ;;  %v249_v14 = vadd.f32 %v248_v12, %v247_v10 }
  0xff   :  { %v142_v15 = vadd.f32 %v237_v13, %v199_v2  ;;  %v162_v16 = vadd.f32 %v249_v14, %v199_v2  ;;  %v238_v17 = vpop.f32.mrb[4].mxu0  ;;  %v250_v18 = vpop.f32.mrb[4].mxu1 }
 0x100   :  { %v239_v19 = vpop.f32.mrb[5].mxu0  ;;  %v251_v20 = vpop.f32.mrb[5].mxu1 }
 0x101   :  { %176 = vst [vmem:[#allocation2 + $0x8] sm:$0xff] %v142_v15  ;;  %180 = vst [vmem:[#allocation2 + $0x28] sm:$0xff] %v162_v16  ;;  %v240_v21 = vadd.f32 %v239_v19, %v238_v17  ;;  %v252_v22 = vadd.f32 %v251_v20, %v250_v18 }
 0x103   :  { %v147_v23 = vadd.f32 %v240_v21, %v199_v2  ;;  %v167_v24 = vadd.f32 %v252_v22, %v199_v2  ;;  %v241_v25 = vpop.f32.mrb[6].mxu0  ;;  %v253_v26 = vpop.f32.mrb[6].mxu1 }
 0x104   :  { %v242_v27 = vpop.f32.mrb[7].mxu0  ;;  %v254_v28 = vpop.f32.mrb[7].mxu1 }
 0x105   :  { %177 = vst [vmem:[#allocation2 + $0x10] sm:$0xff] %v147_v23  ;;  %181 = vst [vmem:[#allocation2 + $0x30] sm:$0xff] %v167_v24  ;;  %v243_v29 = vadd.f32 %v242_v27, %v241_v25  ;;  %v255_v30 = vadd.f32 %v254_v28, %v253_v26 }
 0x107   :  { %v152_v31 = vadd.f32 %v243_v29, %v199_v2  ;;  %v172_v32 = vadd.f32 %v255_v30, %v199_v2 }
 0x109   :  { %178 = vst [vmem:[#allocation2 + $0x18] sm:$0xff] %v152_v31  ;;  %182 = vst [vmem:[#allocation2 + $0x38] sm:$0xff] %v172_v32 }
 0x10a   :  { %318 = shalt.err (!%p315_p4)
}
 0x10b   :  { %s319_s4 = scalar_lea.hbm %s516_s3, 1024 }
 0x10c   :  { %p320_p5 = scmp.ne.s32.totalorder %s516_s3, %s319_s4  ;;  %p323_p6 = scmp.lt.u32.totalorder %s319_s4, %s516_s3 }
 0x10e   :  { %p325_p7 = pnand %p323_p6, %p320_p5 }
 0x110   :  { %328 = shalt.err (!%p325_p7)
}
 0x111   :  { %s332_s8 = smov 128   ;;  %s333_s9 = smov 8  }
 0x112   :  { %194 = dma.vmem_to_hbm [thread:$0]  %s189_s2, 1024, %s516_s3, [#allocation3], %s332_s8, %s332_s8, %s333_s9  }
 0x113   :  { %329 = dma.done.wait [#allocation3], 1024  }
 0x114   :  { %330 = vsyncadd [#allocation3], 4294966272 }
 0x115   :  { %198 = vsyncpa [#allocation3], 1 }

</bundles_post_ra>
